<compile_context>
chip_gen: v7x
topology: tpu7x:2x2x1
jax: 0.10.0
libtpu: 0.0.40
codegen_flags: <defaults>
</compile_context>

<pallas_src>
import functools

import jax
import jax.numpy as jnp
from jax.experimental import pallas as pl
from jax.experimental.pallas import tpu as pltpu

KSIZE = 3  # df = 3x3 same-padding conv


def _pidnode_kernel(params_ref, w_ref, mask_ref, x_ref, out_ref, *, C, H, W, TB):
    """PIDNODE forward, general_type=3, actv_h/actv_df = Identity.

    params_ref (SMEM, [3]):          [kp + softplus(corr), sigmoid(gamma)+kd, ki]
    w_ref      (VMEM, [C, 9C+1]):    im2col conv weights, bias in last column
    mask_ref   (VMEM, [9C+1, HW]):   0/1 SAME-padding validity masks (ones row last)
    x_ref      (VMEM, [TB, 3C, HW]): TB batch elements, row chunks [h | m | v]
    out_ref    (VMEM, [TB, 3C, HW]): [dh | dm | dv]
    """
    HW = H * W
    a = params_ref[0]      # kp + softplus(corr)
    gkd = params_ref[1]    # sigmoid(gamma) + kd
    ki = params_ref[2]

    w_aug = w_ref[...]                               # [C, 9C+1]
    mask = mask_ref[...]                             # [9C+1, HW]
    ones_row = jnp.ones((1, HW), jnp.float32)        # bias lane of the im2col slab

    for bb in range(TB):                             # TB is a small static constant
        h = x_ref[bb, 0:C, :]                        # [C, HW]
        m = x_ref[bb, C:2 * C, :]
        v = x_ref[bb, 2 * C:3 * C, :]

        # im2col: 9 lane-rolled copies of h (zero padding restored by `mask`),
        # plus a ones row so the bias rides along in the matmul.
        taps = []
        for dy in (-1, 0, 1):
            for dx in (-1, 0, 1):
                off = dy * W + dx
                taps.append(h if off == 0
                            else pltpu.roll(h, shift=(-off) % HW, axis=1))
        taps.append(ones_row)
        slab = jnp.concatenate(taps, axis=0) * mask              # [9C+1, HW]

        # df(h) = conv3x3(h) + b as ONE MXU matmul with K = 9C+1.
        df = jnp.dot(w_aug, slab, preferred_element_type=jnp.float32)  # [C, HW]

        # dh = m ; dm = df - (kp+softplus(corr))*h - (sigmoid(gamma)+kd)*m - ki*v ; dv = h
        out_ref[bb, 0:C, :] = m
        out_ref[bb, C:2 * C, :] = df - a * h - gkd * m - ki * v
        out_ref[bb, 2 * C:3 * C, :] = h


def _choose_batch_tile(B, C, HW, budget_bytes=4 << 20):
    """Largest divisor-of-B batch tile that (a) keeps the double-buffered in/out
    blocks under `budget_bytes` and (b) leaves >= 2 grid steps (v7x has 2 TCs)."""
    per_b = 2 * 2 * 3 * C * HW * 4          # in + out, double-buffered, f32
    cap = max(1, budget_bytes // per_b)
    if B >= 2:
        cap = max(1, min(cap, B // 2))      # keep grid extent >= 2
    tb = 1
    for cand in range(1, min(B, cap) + 1):
        if B % cand == 0:
            tb = cand
    return tb


def pidnode_forward(x, w, b, gamma, kp, ki, kd, corr):
    """x: [B, 3C, H, W] float32 (NCHW).  Returns [B, 3C, H, W] float32."""
    B, C3, H, W = x.shape
    C = C3 // 3
    HW = H * W
    K2 = KSIZE * KSIZE

    # Lane-dense view [B, 3C, H*W]; row-major reshape => no data movement.
    x3 = x.astype(jnp.float32).reshape(B, 3 * C, HW)

    # im2col weights: w_aug[o, t*C + i] = w[o, i, t//3, t%3]; bias as last column.
    w_taps = jnp.transpose(w.astype(jnp.float32), (2, 3, 0, 1)).reshape(K2, C, C)
    w_flat = jnp.transpose(w_taps, (1, 0, 2)).reshape(C, K2 * C)
    w_aug = jnp.concatenate([w_flat, b.astype(jnp.float32).reshape(C, 1)], axis=1)

    # Batch-invariant SAME-padding validity masks (0/1), C rows per tap, plus an
    # all-ones row for the bias lane.  Computed once wrapper-side (tap order must
    # match the kernel's dy/dx loop).
    pos = jnp.arange(HW, dtype=jnp.int32)
    row, col = pos // W, pos % W
    mask_rows = []
    for dy in (-1, 0, 1):
        for dx in (-1, 0, 1):
            valid = ((row + dy >= 0) & (row + dy < H) &
                     (col + dx >= 0) & (col + dx < W)).astype(jnp.float32)
            mask_rows.append(jnp.broadcast_to(valid[None, :], (C, HW)))
    mask_rows.append(jnp.ones((1, HW), jnp.float32))
    mask = jnp.concatenate(mask_rows, axis=0)        # [9C+1, HW]

    # Scalar parameter setup done once on the host: kp+softplus(corr),
    # sigmoid(gamma)+kd, ki.
    a = jnp.float32(kp) + jax.nn.softplus(jnp.float32(corr))
    gkd = jax.nn.sigmoid(jnp.float32(gamma)) + jnp.float32(kd)
    params = jnp.stack([a, gkd, jnp.float32(ki)]).astype(jnp.float32)

    TB = _choose_batch_tile(B, C, HW)
    grid = (B // TB,)

    # Rough per-step VMEM need (double-buffered x/out blocks + resident weights,
    # masks, im2col slab and df accumulator), used to size the scoped-VMEM request.
    est = 4 * (2 * 2 * TB * 3 * C * HW
               + 2 * C * (K2 * C + 1)
               + 2 * (K2 * C + 1) * HW
               + TB * (K2 * C + 1 + C) * HW)
    vmem_limit = int(min(100 << 20, max(32 << 20, 2 * est)))

    kernel = functools.partial(_pidnode_kernel, C=C, H=H, W=W, TB=TB)

    out3 = pl.pallas_call(
        kernel,
        out_shape=jax.ShapeDtypeStruct((B, 3 * C, HW), jnp.float32),
        grid=grid,
        in_specs=[
            pl.BlockSpec(memory_space=pltpu.MemorySpace.SMEM),        # PID scalars
            pl.BlockSpec((C, K2 * C + 1), lambda i: (0, 0)),          # conv W (+bias)
            pl.BlockSpec((K2 * C + 1, HW), lambda i: (0, 0)),         # halo masks
            pl.BlockSpec((TB, 3 * C, HW), lambda i: (i, 0, 0)),       # x batch tile
        ],
        out_specs=pl.BlockSpec((TB, 3 * C, HW), lambda i: (i, 0, 0)),
        compiler_params=pltpu.CompilerParams(
            dimension_semantics=("parallel",),
            vmem_limit_bytes=vmem_limit),
    )(params, w_aug, mask, x3)
    return out3.reshape(B, 3 * C, H, W)


def pidnode_reference(x, w, b, gamma, kp, ki, kd, corr):
    """Pure-JAX reference mirroring the PyTorch forward (gt=3, Identity activations)."""
    B, C3, H, W = x.shape
    C = C3 // 3
    h, m, v = x[:, :C], x[:, C:2 * C], x[:, 2 * C:]
    df = jax.lax.conv_general_dilated(
        h, w, window_strides=(1, 1), padding='SAME',
        dimension_numbers=('NCHW', 'OIHW', 'NCHW')) + b.reshape(1, C, 1, 1)
    gkd = jax.nn.sigmoid(jnp.float32(gamma)) + kd
    spc = jax.nn.softplus(jnp.float32(corr))
    dh = m
    dm = -kp * h - gkd * m - ki * v + df - spc * h
    dv = h
    return jnp.concatenate([dh, dm, dv], axis=1)


if __name__ == "__main__":
    key = jax.random.PRNGKey(0)
    B, C, H, W = 2, 4, 16, 16
    kx, kw, kb = jax.random.split(key, 3)

    # x = [h | m | v] along the channel axis, like the PyTorch module expects.
    x = jax.random.normal(kx, (B, 3 * C, H, W), dtype=jnp.float32)

    # df parameters: Conv2d(C, C, 3, padding=1), deterministic init.
    fan_in = C * KSIZE * KSIZE
    w = jax.random.normal(kw, (C, C, KSIZE, KSIZE), dtype=jnp.float32) / jnp.sqrt(fan_in)
    b = 0.1 * jax.random.normal(kb, (C,), dtype=jnp.float32)

    # PIDNODE defaults: gamma=-3, kp=2, ki=1.5, kd=5, corr=-100, general_type=3
    gamma, kp, ki, kd, corr = -3.0, 2.0, 1.5, 5.0, -100.0

    out = pidnode_forward(x, w, b, gamma, kp, ki, kd, corr)
    out = jax.block_until_ready(out)

    ref = pidnode_reference(x, w, b, gamma, kp, ki, kd, corr)
    assert out.shape == (B, 3 * C, H, W), out.shape
    max_err = float(jnp.max(jnp.abs(out - ref)))
    assert jnp.allclose(out, ref, atol=1e-4, rtol=1e-4), f"max_err={max_err}"

    print("KERNEL_OK")
</pallas_src>

<mosaic_0001>
module attributes {stable_mosaic.version = 11 : i64} {
  func.func @_pidnode_kernel(%arg0: i32, %arg1: memref<3xf32, #tpu.memory_space<smem>>, %arg2: memref<4x37xf32, #tpu.memory_space<vmem>>, %arg3: memref<37x256xf32, #tpu.memory_space<vmem>>, %arg4: memref<1x12x256xf32, #tpu.memory_space<vmem>>, %arg5: memref<1x12x256xf32, #tpu.memory_space<vmem>>) attributes {dimension_semantics = [#tpu.dimension_semantics<parallel>], iteration_bounds = array<i64: 2>, scalar_prefetch = 0 : i64, scratch_operands = 0 : i64, tpu.core_type = #tpu.core_type<tc>, window_params = [{transform_indices = @transform_0, window_bounds = array<i64: 3>}, {pipeline_mode = #tpu.pipeline_mode<synchronous>, transform_indices = @transform_1, window_bounds = array<i64: 4, 37>}, {pipeline_mode = #tpu.pipeline_mode<synchronous>, transform_indices = @transform_2, window_bounds = array<i64: 37, 256>}, {transform_indices = @transform_3, window_bounds = array<i64: 1, 12, 256>}, {transform_indices = @transform_4, window_bounds = array<i64: 1, 12, 256>}]} {
    %c0 = arith.constant 0 : index
    %0 = memref.load %arg1[%c0] : memref<3xf32, #tpu.memory_space<smem>>
    %c1 = arith.constant 1 : index
    %1 = memref.load %arg1[%c1] : memref<3xf32, #tpu.memory_space<smem>>
    %c2 = arith.constant 2 : index
    %2 = memref.load %arg1[%c2] : memref<3xf32, #tpu.memory_space<smem>>
    %c0_0 = arith.constant 0 : index
    %c0_1 = arith.constant 0 : index
    %3 = vector.load %arg2[%c0_0, %c0_1] : memref<4x37xf32, #tpu.memory_space<vmem>>, vector<4x37xf32>
    %c0_2 = arith.constant 0 : index
    %c0_3 = arith.constant 0 : index
    %4 = vector.load %arg3[%c0_2, %c0_3] : memref<37x256xf32, #tpu.memory_space<vmem>>, vector<37x256xf32>
    %cst = arith.constant 1.000000e+00 : f32
    %5 = vector.broadcast %cst : f32 to vector<1x256xf32>
    %c0_4 = arith.constant 0 : index
    %c0_5 = arith.constant 0 : index
    %c0_6 = arith.constant 0 : index
    %6 = vector.load %arg4[%c0_4, %c0_5, %c0_6] : memref<1x12x256xf32, #tpu.memory_space<vmem>>, vector<1x4x256xf32>
    %7 = vector.shape_cast %6 : vector<1x4x256xf32> to vector<4x256xf32>
    %c0_7 = arith.constant 0 : index
    %c4 = arith.constant 4 : index
    %c0_8 = arith.constant 0 : index
    %8 = vector.load %arg4[%c0_7, %c4, %c0_8] : memref<1x12x256xf32, #tpu.memory_space<vmem>>, vector<1x4x256xf32>
    %9 = vector.shape_cast %8 : vector<1x4x256xf32> to vector<4x256xf32>
    %c0_9 = arith.constant 0 : index
    %c8 = arith.constant 8 : index
    %c0_10 = arith.constant 0 : index
    %10 = vector.load %arg4[%c0_9, %c8, %c0_10] : memref<1x12x256xf32, #tpu.memory_space<vmem>>, vector<1x4x256xf32>
    %11 = vector.shape_cast %10 : vector<1x4x256xf32> to vector<4x256xf32>
    %c17_i32 = arith.constant 17 : i32
    %12 = tpu.dynamic_rotate %7 by %c17_i32 dim 1 : vector<4x256xf32>, i32 -> vector<4x256xf32>
    %c16_i32 = arith.constant 16 : i32
    %13 = tpu.dynamic_rotate %7 by %c16_i32 dim 1 : vector<4x256xf32>, i32 -> vector<4x256xf32>
    %c15_i32 = arith.constant 15 : i32
    %14 = tpu.dynamic_rotate %7 by %c15_i32 dim 1 : vector<4x256xf32>, i32 -> vector<4x256xf32>
    %c1_i32 = arith.constant 1 : i32
    %15 = tpu.dynamic_rotate %7 by %c1_i32 dim 1 : vector<4x256xf32>, i32 -> vector<4x256xf32>
    %c255_i32 = arith.constant 255 : i32
    %16 = tpu.dynamic_rotate %7 by %c255_i32 dim 1 : vector<4x256xf32>, i32 -> vector<4x256xf32>
    %c241_i32 = arith.constant 241 : i32
    %17 = tpu.dynamic_rotate %7 by %c241_i32 dim 1 : vector<4x256xf32>, i32 -> vector<4x256xf32>
    %c240_i32 = arith.constant 240 : i32
    %18 = tpu.dynamic_rotate %7 by %c240_i32 dim 1 : vector<4x256xf32>, i32 -> vector<4x256xf32>
    %c239_i32 = arith.constant 239 : i32
    %19 = tpu.dynamic_rotate %7 by %c239_i32 dim 1 : vector<4x256xf32>, i32 -> vector<4x256xf32>
    %20 = tpu.concatenate %12, %13, %14, %15, %7, %16, %17, %18, %19, %5 in 0 : vector<4x256xf32>, vector<4x256xf32>, vector<4x256xf32>, vector<4x256xf32>, vector<4x256xf32>, vector<4x256xf32>, vector<4x256xf32>, vector<4x256xf32>, vector<4x256xf32>, vector<1x256xf32> -> vector<37x256xf32>
    %21 = arith.mulf %20, %4 : vector<37x256xf32>
    %cst_11 = arith.constant dense<0.000000e+00> : vector<4x256xf32>
    %22 = tpu.matmul %3, %21, %cst_11 {dimension_numbers = #tpu.dot_dimension_numbers<[1], [0], [0], [1], [0, 0, 1, 1], [], []>} : vector<4x37xf32>, vector<37x256xf32>, vector<4x256xf32> -> vector<4x256xf32>
    %c0_12 = arith.constant 0 : index
    %c0_13 = arith.constant 0 : index
    %c0_14 = arith.constant 0 : index
    %23 = vector.load %arg5[%c0_12, %c0_13, %c0_14] : memref<1x12x256xf32, #tpu.memory_space<vmem>>, vector<1x4x256xf32>
    %24 = vector.shape_cast %23 : vector<1x4x256xf32> to vector<4x256xf32>
    %25 = vector.shape_cast %9 : vector<4x256xf32> to vector<1x4x256xf32>
    tpu.vector_store %arg5[%c0_12, %c0_13, %c0_14], %25 {strides = array<i32>} : memref<1x12x256xf32, #tpu.memory_space<vmem>>, vector<1x4x256xf32>,
    %26 = vector.broadcast %0 : f32 to vector<4x256xf32>
    %27 = arith.mulf %26, %7 : vector<4x256xf32>
    %28 = arith.subf %22, %27 : vector<4x256xf32>
    %29 = vector.broadcast %1 : f32 to vector<4x256xf32>
    %30 = arith.mulf %29, %9 : vector<4x256xf32>
    %31 = arith.subf %28, %30 : vector<4x256xf32>
    %32 = vector.broadcast %2 : f32 to vector<4x256xf32>
    %33 = arith.mulf %32, %11 : vector<4x256xf32>
    %34 = arith.subf %31, %33 : vector<4x256xf32>
    %c0_15 = arith.constant 0 : index
    %c4_16 = arith.constant 4 : index
    %c0_17 = arith.constant 0 : index
    %35 = vector.load %arg5[%c0_15, %c4_16, %c0_17] : memref<1x12x256xf32, #tpu.memory_space<vmem>>, vector<1x4x256xf32>
    %36 = vector.shape_cast %35 : vector<1x4x256xf32> to vector<4x256xf32>
    %37 = vector.shape_cast %34 : vector<4x256xf32> to vector<1x4x256xf32>
    tpu.vector_store %arg5[%c0_15, %c4_16, %c0_17], %37 {strides = array<i32>} : memref<1x12x256xf32, #tpu.memory_space<vmem>>, vector<1x4x256xf32>,
    %c0_18 = arith.constant 0 : index
    %c8_19 = arith.constant 8 : index
    %c0_20 = arith.constant 0 : index
    %38 = vector.load %arg5[%c0_18, %c8_19, %c0_20] : memref<1x12x256xf32, #tpu.memory_space<vmem>>, vector<1x4x256xf32>
    %39 = vector.shape_cast %38 : vector<1x4x256xf32> to vector<4x256xf32>
    %40 = vector.shape_cast %7 : vector<4x256xf32> to vector<1x4x256xf32>
    tpu.vector_store %arg5[%c0_18, %c8_19, %c0_20], %40 {strides = array<i32>} : memref<1x12x256xf32, #tpu.memory_space<vmem>>, vector<1x4x256xf32>,
    return
  }
  func.func @transform_0(%arg0: i32) -> i32 {
    %c0_i32 = arith.constant 0 : i32
    %c0_i32_0 = arith.constant 0 : i32
    return %c0_i32 : i32
  }
  func.func @transform_1(%arg0: i32) -> (i32, i32) {
    %c0_i32 = arith.constant 0 : i32
    %c0_i32_0 = arith.constant 0 : i32
    %c0_i32_1 = arith.constant 0 : i32
    return %c0_i32, %c0_i32_0 : i32, i32
  }
  func.func @transform_2(%arg0: i32) -> (i32, i32) {
    %c0_i32 = arith.constant 0 : i32
    %c0_i32_0 = arith.constant 0 : i32
    %c0_i32_1 = arith.constant 0 : i32
    return %c0_i32, %c0_i32_0 : i32, i32
  }
  func.func @transform_3(%arg0: i32) -> (i32, i32, i32) {
    %c0_i32 = arith.constant 0 : i32
    %c0_i32_0 = arith.constant 0 : i32
    %c0_i32_1 = arith.constant 0 : i32
    return %arg0, %c0_i32, %c0_i32_0 : i32, i32, i32
  }
  func.func @transform_4(%arg0: i32) -> (i32, i32, i32) {
    %c0_i32 = arith.constant 0 : i32
    %c0_i32_0 = arith.constant 0 : i32
    %c0_i32_1 = arith.constant 0 : i32
    return %arg0, %c0_i32, %c0_i32_0 : i32, i32, i32
  }
}

</mosaic_0001>

<bundles_post_ra>
// kernel: tpu_custom_call.1
= control target key start
LH: loop header
LB: loop body
LE: loop exit
PB: predicated region body
PF: predicated region fallthrough
CT: control target
= control target key end

     0   :  { %9 = vsyncpa [#allocation3], 0  ;;  %s641_s15 = smov 0   ;;  %s767_s0 = inlined_call_operand.vmem [shape: f32[3], index: 0, kind: input, shape index: {}]   ;;  %s768_s1 = inlined_call_operand.vmem [shape: f32[4,37], index: 1, kind: input, shape index: {}]   ;;  %s769_s2 = inlined_call_operand.vmem [shape: f32[37,256], index: 2, kind: input, shape index: {}]   ;;  %s770_s3 = inlined_call_operand.vmem [shape: f32[2,12,256], index: 3, kind: input, shape index: {}]   ;;  %s771_s4 = inlined_call_operand.vmem [shape: f32[2,12,256], index: 4, kind: output, shape index: {}]  }
   0x1 LB: > { %s523_s16 = sadd.s32 4294967295, %s604_s15   ;;  %p525_p0 = scmp.ge.s32.totalorder %s604_s15, 1  ;;  %s604_s15 = sphi %s641_s15, %s15_s15  }
   0x2   : > { %p135_p1 = scmp.lt.s32.totalorder %s604_s15, 3  ;;  %s148_s19 = sshll.u32 %s767_s0, 4  ;;  %s149_s19 = int_to_ptr.vmem [resolvable:$true] %s148_s19 }
   0x3   : > { %p559_p3 = scmp.eq.s32.totalorder %s523_s16, 0  ;;  %s579_s21 = scalar_lea.vmem %s149_s19, 16 }
   0x4   : > { %p652_p2 = pnand %p525_p0, %p135_p1  ;;  %p580_p6 = scmp.ne.s32.totalorder %s149_s19, %s579_s21 }
   0x5   : > { %p587_p10 = scmp.lt.s32.totalorder %s149_s19, %s149_s19  ;;  %p588_p11 = scmp.lt.s32.totalorder %s579_s21, %s579_s21 }
   0x6   : > { %p555_p4 = pneg %p652_p2 }
   0x7   : > { %p589_p12 = por %p588_p11, %p587_p10 }
   0x8   : > { %p556_p5 = pnand %p559_p3, %p555_p4 }
   0xa   : > { %p581_p7 = pneg %p556_p5 }
   0xc   : > { %p582_p8 = pnand %p581_p7, %p580_p6 }
   0xe   : > { %p583_p9 = pneg %p582_p8 }
  0x10   : > { %p590_p13 = pnand %p589_p12, %p583_p9 }
  0x12   : > { %593 = shalt.err (!%p590_p13)
}
  0x13   : > { %s606_s22 = smov [#allocation2]   ;;  %175 = sbr.rel (%p652_p2) target bundleno = 408 (0x198), region = 36 }
  0x14   : > { %558 = dma.vmem_to_smem (!%p556_p5), %s149_s19, 16, %s606_s22, [#allocation3]  }
  0x1a   : > { %599 = dma.done.wait (%p559_p3), [#allocation3], 16  }
  0x1b   : > { %601 = vsyncadd (%p559_p3), [#allocation3], 4294967280 }
  0x1c   : > { %181 = sfence }
  0x1d   : > { %p202_p0 = scmp.lt.s32.totalorder %s523_s16, 1  ;;  %s607_s27 = smov 1   ;;  %v613_v2 = vmov 0.0   ;;  %v236_v3 = vlaneseq  ;;  %vm314_vm3 = vcmask 1043456   ;;  %v217_v19 = vld [vmem:[%s769_s2 + $0x8] sm:$0xff]  ;;  %v219_v25 = vld [vmem:[%s769_s2 + $0x18] sm:$0xff] }
  0x1e   : > { %s608_s28 = smov 16   ;;  %s609_s29 = smov 17   ;;  %410 = vmatprep.mubr.f32.mxu0 %v613_v2  ;;  %v216_v27 = vld [vmem:[%s769_s2] sm:$0xff]  ;;  %v218_v28 = vld [vmem:[%s769_s2 + $0x10] sm:$0xff]  ;;  %v221_v49 = vld [vmem:[%s769_s2 + $0x28] sm:$0xff]  ;;  %vm339_vm9 = vcmask 1044480  }
  0x1f   : > { %s774_s16 = smov (!%p202_p0, %s523_s16), 1  ;;  %s610_s30 = smov 15   ;;  %v699_v6 = vand.u32 127, %v236_v3  ;;  %v222_v55 = vld [vmem:[%s769_s2 + $0x30] sm:$0xff]  ;;  %v223_v56 = vld [vmem:[%s769_s2 + $0x38] sm:$0xff]  ;;  %v220_v58 = vld [vmem:[%s769_s2 + $0x20] sm:$0xff] }
  0x20   : > { %s541_s23 = sshll.u32 %s774_s16, 5  ;;  %s611_s5 = smov 127   ;;  %vm335_vm10 = vcmask 302080  }
  0x21   : > { %s666_s26 = scalar_lea.vmem %s770_s3, %s541_s23  ;;  %s612_s6 = smov 112   ;;  %vm245_vm0 = vcmp.lt.s32.totalorder %v699_v6, 16  ;;  %vm259_vm1 = vcmp.lt.s32.totalorder %v699_v6, 1  ;;  %vm238_vm2 = vcmp.lt.s32.totalorder %v699_v6, 17  ;;  %vm252_vm4 = vcmp.lt.s32.totalorder %v699_v6, 15 }
  0x22   : > { %v669_v0 = vld [vmem:[%s666_s26] sm:$0xf]  ;;  %v674_v1 = vld [vmem:[%s666_s26 + $0x8] sm:$0xf]  ;;  %s689_s9 = scalar_lea.vmem %s771_s4, %s541_s23  ;;  %s614_s10 = smov 113   ;;  %vm266_vm5 = vcmp.lt.s32.totalorder %v699_v6, 127 }
  0x23   : > { %255 = vrot.lane.b32.xlu1 %v669_v0, %s607_s27  ;;  %241 = vrot.lane.b32.xlu0 %v669_v0, %s608_s28  ;;  %454 = vst [vmem:[%s689_s9 + $0x10] sm:$0xf] %v669_v0  ;;  %455 = vst [vmem:[%s689_s9 + $0x18] sm:$0xf] %v674_v1  ;;  %s615_s11 = smov 111   ;;  %vm280_vm6 = vcmp.lt.s32.totalorder %v699_v6, 112 }
  0x24   : > { %vm273_vm7 = vcmp.lt.s32.totalorder %v699_v6, 113  ;;  %vm287_vm8 = vcmp.lt.s32.totalorder %v699_v6, 111  ;;  %s212_s12 = sld [smem:[#allocation2]]  ;;  %s535_s13 = sld [smem:[#allocation2 + $0x2]] }
  0x27   : > { %257 = vrot.lane.b32.xlu1 %v674_v1, %s607_s27  ;;  %243 = vrot.lane.b32.xlu0 %v674_v1, %s608_s28 }
  0x2b   : > { %234 = vrot.lane.b32.xlu1 %v674_v1, %s609_s29  ;;  %232 = vrot.lane.b32.xlu0 %v669_v0, %s609_s29 }
  0x2f   : > { %250 = vrot.lane.b32.xlu1 %v674_v1, %s610_s30  ;;  %248 = vrot.lane.b32.xlu0 %v669_v0, %s610_s30 }
  0x33   : > { %264 = vrot.lane.b32.xlu1 %v674_v1, %s611_s5  ;;  %262 = vrot.lane.b32.xlu0 %v669_v0, %s611_s5 }
  0x37   : > { %278 = vrot.lane.b32.xlu1 %v674_v1, %s612_s6  ;;  %276 = vrot.lane.b32.xlu0 %v669_v0, %s612_s6 }
  0x3b   : > { %271 = vrot.lane.b32.xlu1 %v674_v1, %s614_s10  ;;  %269 = vrot.lane.b32.xlu0 %v669_v0, %s614_s10 }
  0x3f   : > { %285 = vrot.lane.b32.xlu1 %v674_v1, %s615_s11  ;;  %283 = vrot.lane.b32.xlu0 %v669_v0, %s615_s11  ;;  %s534_s11 = sld [smem:[#allocation2 + $0x1]] }
  0x95   : > { %v256_v4 = vpop.permute.xlu1 %255  ;;  %v242_v5 = vpop.permute.xlu0 %241 }
  0x99   : > { %v258_v7 = vpop.permute.xlu1 %257  ;;  %v244_v8 = vpop.permute.xlu0 %243 }
  0x9a   : > { %v246_v9 = vsel %vm245_vm0, %v242_v5, %v244_v8  ;;  %v247_v10 = vsel %vm245_vm0, %v244_v8, %v242_v5  ;;  %v260_v13 = vsel %vm259_vm1, %v256_v4, %v258_v7  ;;  %v261_v14 = vsel %vm259_vm1, %v258_v7, %v256_v4  ;;  %v225_v7 = vld [vmem:[%s769_s2 + $0x48] sm:$0x1f] }
  0x9b   : > { %v292_v17 = vrot.slane %v247_v10, 4  ;;  %v293_v18 = vrot.slane %v246_v9, 4  ;;  %v298_v20 = vrot.slane %v261_v14, 4  ;;  %v299_v21 = vrot.slane %v260_v13, 4  ;;  %v224_v9 = vld [vmem:[%s769_s2 + $0x40] sm:$0x1f] }
  0x9d   : > { %v235_v11 = vpop.permute.xlu1 %234  ;;  %v233_v12 = vpop.permute.xlu0 %232 }
  0x9e   : > { %v239_v15 = vsel %vm238_vm2, %v233_v12, %v235_v11  ;;  %v240_v16 = vsel %vm238_vm2, %v235_v11, %v233_v12 }
  0x9f   : > { %v315_v22 = vsel %vm314_vm3, %v240_v16, %v292_v17  ;;  %v316_v26 = vsel %vm314_vm3, %v239_v15, %v293_v18  ;;  %v215_v17 = vld [vmem:[%s768_s1] sm:$0xf]  ;;  %v228_v18 = vld [vmem:[%s666_s26] sm:$0xf0] }
  0xa0   : > { %v326_v33 = vmul.f32 %v316_v26, %v217_v19  ;;  %v325_v35 = vmul.f32 %v315_v22, %v216_v27  ;;  %v419_v19 = vrot.slane %v228_v18, 4  ;;  %v430_v22 = vstv %s534_s11  ;;  %v230_v27 = vld [vmem:[%s666_s26 + $0x10] sm:$0xf] }
  0xa1   : > { %v251_v23 = vpop.permute.xlu1 %250  ;;  %v249_v24 = vpop.permute.xlu0 %248 }
  0xa2   : > { %v253_v29 = vsel %vm252_vm4, %v249_v24, %v251_v23  ;;  %v254_v30 = vsel %vm252_vm4, %v251_v23, %v249_v24  ;;  %423 = vst [vmem:[%s689_s9] sm:$0xf] %v419_v19  ;;  %v425_v23 = vstv %s212_s12  ;;  %v431_v24 = vmul.f32 %v430_v22, %v228_v18 }
  0xa3   : > { %v317_v31 = vsel %vm314_vm3, %v254_v30, %v298_v20  ;;  %v318_v32 = vsel %vm314_vm3, %v253_v29, %v299_v21  ;;  %v229_v20 = vld [vmem:[%s666_s26 + $0x8] sm:$0xf0]  ;;  %v426_v26 = vmul.f32 %v425_v23, %v669_v0  ;;  %v427_v29 = vmul.f32 %v425_v23, %v674_v1 }
  0xa4   : > { %v328_v34 = vmul.f32 %v318_v32, %v219_v25  ;;  %v327_v36 = vmul.f32 %v317_v31, %v218_v28  ;;  %v420_v21 = vrot.slane %v229_v20, 4  ;;  %v432_v25 = vmul.f32 %v430_v22, %v229_v20  ;;  %v231_v31 = vld [vmem:[%s666_s26 + $0x18] sm:$0xf] }
  0xa5   : > { %v265_v37 = vpop.permute.xlu1 %264  ;;  %v263_v38 = vpop.permute.xlu0 %262  ;;  %v441_v28 = vstv %s535_s13  ;;  %v435_v30 = vrot.slane %v431_v24, 4 }
  0xa6   : > { %v267_v39 = vsel %vm266_vm5, %v263_v38, %v265_v37  ;;  %v268_v40 = vsel %vm266_vm5, %v265_v37, %v263_v38  ;;  %v543_v41 = vpack.c.bf16 %v328_v34, %v326_v33  ;;  %v545_v42 = vpack.c.bf16 %v327_v36, %v325_v35  ;;  %424 = vst [vmem:[%s689_s9 + $0x8] sm:$0xf] %v420_v21 }
  0xa7   : > { %v304_v43 = vrot.slane %v267_v39, 4  ;;  %v305_v44 = vrot.slane %v268_v40, 4  ;;  %v436_v33 = vrot.slane %v432_v25, 4  ;;  %v442_v35 = vmul.f32 %v441_v28, %v230_v27 }
  0xa8   : > { %544 = vmatprep.subr.bf16.mxu0 %v543_v41  ;;  %v443_v38 = vmul.f32 %v441_v28, %v231_v31 }
  0xa9   : > { %v279_v45 = vpop.permute.xlu1 %278  ;;  %546 = vmatpush1.bf16.msra.mxu0 %v545_v42  ;;  %v277_v46 = vpop.permute.xlu0 %276  ;;  %v319_v50 = vsel %vm314_vm3, %v669_v0, %v304_v43  ;;  %v320_v51 = vsel %vm314_vm3, %v674_v1, %v305_v44 }
  0xaa   : > { %v281_v47 = vsel %vm280_vm6, %v277_v46, %v279_v45  ;;  %v282_v48 = vsel %vm280_vm6, %v279_v45, %v277_v46  ;;  %v330_v3 = vmul.f32 %v320_v51, %v221_v49  ;;  %v329_v4 = vmul.f32 %v319_v50, %v220_v58 }
  0xab   : > { %v310_v52 = vrot.slane %v281_v47, 4  ;;  %v311_v53 = vrot.slane %v282_v48, 4 }
  0xad   : > { %v272_v54 = vpop.permute.xlu1 %271  ;;  %v270_v57 = vpop.permute.xlu0 %269 }
  0xae   : > { %v274_v59 = vsel %vm273_vm7, %v270_v57, %v272_v54  ;;  %v275_v60 = vsel %vm273_vm7, %v272_v54, %v270_v57 }
  0xaf   : > { %v321_v61 = vsel %vm314_vm3, %v274_v59, %v310_v52  ;;  %v322_v62 = vsel %vm314_vm3, %v275_v60, %v311_v53 }
  0xb0   : > { %v331_v63 = vmul.f32 %v321_v61, %v222_v55  ;;  %v332_v2 = vmul.f32 %v322_v62, %v223_v56 }
  0xb1   : > { %v286_v5 = vpop.permute.xlu1 %285  ;;  %v284_v8 = vpop.permute.xlu0 %283 }
  0xb2   : > { %v288_v10 = vsel %vm287_vm8, %v284_v8, %v286_v5  ;;  %v289_v11 = vsel %vm287_vm8, %v286_v5, %v284_v8  ;;  %v547_v12 = vpack.c.bf16 %v332_v2, %v330_v3  ;;  %v549_v6 = vpack.c.bf16 %v331_v63, %v329_v4 }
  0xb3   : > { %v323_v13 = vsel %vm314_vm3, %v288_v10, 1.0  ;;  %v324_v14 = vsel %vm314_vm3, %v289_v11, 1.0 }
  0xb4   : > { %v334_v15 = vmul.f32 %v324_v14, %v225_v7  ;;  %548 = vmatprep.subr.bf16.mxu0 %v547_v12  ;;  %v333_v16 = vmul.f32 %v323_v13, %v224_v9 }
  0xb5   : > { %550 = vmatpush1.bf16.msra.mxu0 %v549_v6 }
  0xb6   : > { %536 = vmatprep.subr.msk.mxu0 %vm339_vm9, %v334_v15 }
  0xb9   : > { %537 = vmatpush1.msk.msra.mxu0 %vm339_vm9, %v333_v16 }
  0xba   : > { %538 = vmatmul.mubr.msk.f32.vlgmr.msra.gmra.mrb[0].mxu0 %vm335_vm10, %v215_v17 }
 0x18d   : > { %v412_v32 = vpop.f32.mrb[0].mxu0 }
 0x18e   : > { %v428_v34 = vsub.f32 %v412_v32, %v426_v26  ;;  %v414_v36 = vpop.f32.mrb[1].mxu0 }
 0x18f   : > { %v429_v37 = vsub.f32 %v414_v36, %v427_v29 }
 0x190   : > { %v439_v39 = vsub.f32 %v428_v34, %v435_v30 }
 0x191   : > { %v440_v40 = vsub.f32 %v429_v37, %v436_v33 }
 0x192   : > { %v444_v41 = vsub.f32 %v439_v39, %v442_v35 }
 0x193   : > { %v445_v42 = vsub.f32 %v440_v40, %v443_v38 }
 0x194   : > { %v448_v0 = vrot.slane %v444_v41, 4 }
 0x195   : > { %v449_v43 = vrot.slane %v445_v42, 4 }
 0x196   : > { %452 = vst [vmem:[%s689_s9] sm:$0xf0] %v448_v0 }
 0x197   : > { %453 = vst [vmem:[%s689_s9 + $0x8] sm:$0xf0] %v449_v43 }
 0x198 PF: > { %s15_s15 = sadd.s32 1, %s604_s15  }
 0x199   : > { %p12_p1 = scmp.ge.s32.totalorder %s15_s15, 4  }
 0x19b   :  { %14 = sbr.rel (!%p12_p1) target bundleno = 1 (0x1), region = 71 }
 0x1a2   :  { %477 = vsyncpa [#allocation3], 1 }
 0x1a3   :  { %479 = vsyncpa [#allocation3 + $0x1], 1 }

</bundles_post_ra>
